<compile_context>
chip_gen: v7x
topology: tpu7x:2x2x1
jax: 0.10.0
libtpu: 0.0.40
codegen_flags: <defaults>
</compile_context>

<pallas_src>
import functools

import numpy as np
import jax
import jax.numpy as jnp
from jax import lax
from jax.experimental import pallas as pl
from jax.experimental.pallas import tpu as pltpu

# Problem sizes implied by the module: x.view(16, -1) followed by Linear(24, 10) forces
# each sample to be 16 rows and the pooled conv2 length to be 1.  With L=56:
# conv1: 56+2-20+1 = 39 -> pool -> 19 -> conv2: 19+2-20+1 = 2 -> pool -> 1.
NGROUP = 16           # rows per sample (fixed by x.view(16, -1))
L = 56                # per-row signal length
K = 20                # conv kernel size
C1 = 9                # conv1 out channels
C2 = 24               # conv2 out channels
L1 = L + 2 - K + 1    # 39, conv1 output length
P1 = L1 // 2          # 19, after max_pool1d(2)
NOUT = 10

# Lane-dense layout constants.
XROWS = 64            # x lane width / W1f rows (56 data + 1 const-1 lane + pad)
ONE_LANE = L          # lane 56 carries the constant 1.0 that feeds the folded biases
HALF1 = 256           # per-parity width of fused conv1 output (>= P1*C1 = 171)
HALF2 = 128           # per-position width of fused conv2 output (>= C2 = 24)
NPAD = 128            # padded fc1 output width (>= NOUT)
TILE_M = 256          # row tile: matches v6e/v7x MXU height (also fine on v5e: 2 pushes)


def simple_cnn_kernel(x_ref, w1_ref, w2_ref, fw_ref, out_ref):
    # conv1 (+padding shift, im2col, bias via const-1 lane) fused into one bf16 matmul.
    # h layout: [even-t conv1 outputs | odd-t conv1 outputs], each half flattened (t, c).
    h = jnp.dot(x_ref[...], w1_ref[...], preferred_element_type=jnp.float32)
    h = jnp.maximum(h, 0.0)                                   # ReLU (f32, VPU)

    # max_pool1d(2): elementwise max of the two 128-lane-aligned halves.
    pooled = jnp.maximum(h[:, :HALF1], h[:, HALF1:])          # (tile, 256)

    # conv2 (both output positions, padding=1 tap-skip, bias via emit-1 lane) fused.
    z = jnp.dot(pooled.astype(jnp.bfloat16), w2_ref[...],
                preferred_element_type=jnp.float32)           # (tile, 256)

    # ReLU + max_pool1d(2) over the length-2 output axis.
    h2 = jnp.maximum(jnp.maximum(z[:, :HALF2], 0.0),
                     jnp.maximum(z[:, HALF2:], 0.0))          # (tile, 128)

    # x.view(16, -1) is the identity here (pooled length == 1), then fc1 (bias folded).
    out_ref[...] = jnp.dot(h2.astype(jnp.bfloat16), fw_ref[...],
                           preferred_element_type=jnp.float32)


def prepare_params(params):
    """One-time re-layout of PyTorch params into fused, lane-dense bf16 matrices."""
    w1, b1, w2, b2, fw, fb = (np.asarray(p, np.float32) for p in params)

    # Fused conv1 weight (XROWS, 2*HALF1): column par*HALF1 + j*C1 + c produces conv1
    # output (t=2j+par, channel c).  The padding=1 shift is baked into the rows (padded
    # input position p maps to x lane p-1; pad taps p==0 / p==57 are simply dropped).
    # Row ONE_LANE (the constant-1 x lane) carries b1 and the emit-1 columns.
    W1f = np.zeros((XROWS, 2 * HALF1), np.float32)
    for j in range(P1):
        for par in range(2):
            t = 2 * j + par
            col0 = par * HALF1 + j * C1
            for k in range(K):
                p = t + k
                if 1 <= p <= L:
                    W1f[p - 1, col0:col0 + C1] = w1[:, 0, k]
            W1f[ONE_LANE, col0:col0 + C1] = b1
    W1f[ONE_LANE, HALF1 - 1] = 1.0          # emit-1 -> pooled lane HALF1-1 (bias feed)
    W1f[ONE_LANE, 2 * HALF1 - 1] = 1.0

    # Fused conv2 weight (HALF1, 2*HALF2).  conv2 has padding=1, kernel 20, input len 19:
    # output t=0 uses taps k=1..19, t=1 uses taps k=0..18 (pad taps skipped).
    # Row HALF1-1 (the emit-1 pooled lane) carries b2 and the next emit-1 columns.
    W2f = np.zeros((HALF1, 2 * HALF2), np.float32)
    for j in range(P1):
        W2f[j * C1:(j + 1) * C1, 0:C2] = w2[:, :, j + 1].T            # output position 0
        W2f[j * C1:(j + 1) * C1, HALF2:HALF2 + C2] = w2[:, :, j].T    # output position 1
    W2f[HALF1 - 1, 0:C2] = b2
    W2f[HALF1 - 1, HALF2:HALF2 + C2] = b2
    W2f[HALF1 - 1, HALF2 - 1] = 1.0         # emit-1 -> h2 lane HALF2-1 (fb feed)
    W2f[HALF1 - 1, 2 * HALF2 - 1] = 1.0

    # fc1, lane-padded; fb folded into the emit-1 row.
    FWp = np.zeros((HALF2, NPAD), np.float32)
    FWp[:C2, :NOUT] = fw.T
    FWp[HALF2 - 1, :NOUT] = fb

    return tuple(jnp.asarray(a, jnp.bfloat16) for a in (W1f, W2f, FWp))


@functools.partial(jax.jit, static_argnames=("tile_m",))
def simple_cnn_forward(x, prepped, tile_m=TILE_M):
    """x: (B, 16, 1, L) f32 (B stacked PyTorch forwards).  prepped: prepare_params()."""
    W1f, W2f, FWp = prepped
    B = x.shape[0]
    R = B * NGROUP
    rows = ((R + tile_m - 1) // tile_m) * tile_m     # pad rows to a tile multiple

    # Lane-dense bf16 input: lanes 0..55 = signal, lane 56 = 1.0 (bias feed), rest 0.
    xa = jnp.zeros((rows, XROWS), jnp.bfloat16)
    xa = xa.at[:R, :L].set(x.reshape(R, L).astype(jnp.bfloat16))
    xa = xa.at[:R, ONE_LANE].set(jnp.bfloat16(1.0))

    out = pl.pallas_call(
        simple_cnn_kernel,
        out_shape=jax.ShapeDtypeStruct((rows, NPAD), jnp.float32),
        grid=(rows // tile_m,),
        in_specs=[
            pl.BlockSpec((tile_m, XROWS), lambda i: (i, 0)),        # x: streams per tile
            pl.BlockSpec((XROWS, 2 * HALF1), lambda i: (0, 0)),     # weights: resident
            pl.BlockSpec((HALF1, 2 * HALF2), lambda i: (0, 0)),
            pl.BlockSpec((HALF2, NPAD), lambda i: (0, 0)),
        ],
        out_specs=pl.BlockSpec((tile_m, NPAD), lambda i: (i, 0)),
        compiler_params=pltpu.CompilerParams(
            dimension_semantics=("parallel",)),                     # v7x: both TCs
    )(xa, W1f, W2f, FWp)
    return out[:R, :NOUT].reshape(B, NGROUP, NOUT)


def ref_forward(x, params):
    """Pure-JAX f32 reference reproducing the PyTorch forward, per 16-row sample."""
    w1, b1, w2, b2, fw, fb = params
    B = x.shape[0]
    xr = x.reshape(B * NGROUP, 1, L)
    dn = ("NCH", "OIH", "NCH")
    y = lax.conv_general_dilated(xr, w1, (1,), [(1, 1)], dimension_numbers=dn)
    y = jax.nn.relu(y + b1[None, :, None])
    y = y[:, :, :(y.shape[2] // 2) * 2].reshape(y.shape[0], y.shape[1], -1, 2).max(-1)
    y = lax.conv_general_dilated(y, w2, (1,), [(1, 1)], dimension_numbers=dn)
    y = jax.nn.relu(y + b2[None, :, None])
    y = y[:, :, :(y.shape[2] // 2) * 2].reshape(y.shape[0], y.shape[1], -1, 2).max(-1)
    y = y.reshape(B, NGROUP, C2)     # per-sample x.view(16, -1), pooled length == 1
    return y @ fw.T + fb


def init_params(key):
    ks = jax.random.split(key, 6)

    def u(k, shape, fan_in):
        bound = 1.0 / jnp.sqrt(fan_in)
        return jax.random.uniform(k, shape, jnp.float32, -bound, bound)

    w1 = u(ks[0], (C1, 1, K), 1 * K)
    b1 = u(ks[1], (C1,), 1 * K)
    w2 = u(ks[2], (C2, C1, K), C1 * K)
    b2 = u(ks[3], (C2,), C1 * K)
    fw = u(ks[4], (NOUT, C2), C2)
    fb = u(ks[5], (NOUT,), C2)
    return (w1, b1, w2, b2, fw, fb)


if __name__ == "__main__":
    key = jax.random.PRNGKey(0)
    kx, kp = jax.random.split(key)
    B = 32                                    # 32 stacked forwards -> 512 rows, 2 grid steps
    x = jax.random.normal(kx, (B, NGROUP, 1, L), jnp.float32)
    params = init_params(kp)
    prepped = prepare_params(params)          # hoisted: done once, not per forward

    out = simple_cnn_forward(x, prepped)
    out = jax.block_until_ready(out)
    assert out.shape == (B, NGROUP, NOUT) and out.dtype == jnp.float32

    ref = jax.block_until_ready(ref_forward(x, params))
    # Tolerance reflects bf16 matmul operands (f32 accumulation); layout/fusion is exact.
    assert jnp.allclose(out, ref, rtol=2e-2, atol=2e-2), (
        f"max abs err {float(jnp.max(jnp.abs(out - ref)))}")

    print("KERNEL_OK")
</pallas_src>

<mosaic_0001>
module attributes {stable_mosaic.version = 11 : i64} {
  func.func @simple_cnn_kernel(%arg0: i32, %arg1: memref<256x64xbf16, #tpu.memory_space<vmem>>, %arg2: memref<64x512xbf16, #tpu.memory_space<vmem>>, %arg3: memref<256x256xbf16, #tpu.memory_space<vmem>>, %arg4: memref<128x128xbf16, #tpu.memory_space<vmem>>, %arg5: memref<256x128xf32, #tpu.memory_space<vmem>>) attributes {dimension_semantics = [#tpu.dimension_semantics<parallel>], iteration_bounds = array<i64: 2>, scalar_prefetch = 0 : i64, scratch_operands = 0 : i64, tpu.core_type = #tpu.core_type<tc>, window_params = [{transform_indices = @transform_0, window_bounds = array<i64: 256, 64>}, {pipeline_mode = #tpu.pipeline_mode<synchronous>, transform_indices = @transform_1, window_bounds = array<i64: 64, 512>}, {pipeline_mode = #tpu.pipeline_mode<synchronous>, transform_indices = @transform_2, window_bounds = array<i64: 256, 256>}, {pipeline_mode = #tpu.pipeline_mode<synchronous>, transform_indices = @transform_3, window_bounds = array<i64: 128, 128>}, {transform_indices = @transform_4, window_bounds = array<i64: 256, 128>}]} {
    %c0 = arith.constant 0 : index
    %c0_0 = arith.constant 0 : index
    %0 = vector.load %arg1[%c0, %c0_0] : memref<256x64xbf16, #tpu.memory_space<vmem>>, vector<256x64xbf16>
    %c0_1 = arith.constant 0 : index
    %c0_2 = arith.constant 0 : index
    %1 = vector.load %arg2[%c0_1, %c0_2] : memref<64x512xbf16, #tpu.memory_space<vmem>>, vector<64x512xbf16>
    %cst = arith.constant dense<0.000000e+00> : vector<256x512xf32>
    %2 = tpu.matmul %0, %1, %cst {dimension_numbers = #tpu.dot_dimension_numbers<[1], [0], [0], [1], [0, 0, 1, 1], [], []>} : vector<256x64xbf16>, vector<64x512xbf16>, vector<256x512xf32> -> vector<256x512xf32>
    %cst_3 = arith.constant 0.000000e+00 : f32
    %3 = vector.broadcast %cst_3 : f32 to vector<256x512xf32>
    %4 = arith.maximumf %2, %3 : vector<256x512xf32>
    %5 = vector.extract_strided_slice %4 {offsets = [0, 0], sizes = [256, 256], strides = [1, 1]} : vector<256x512xf32> to vector<256x256xf32>
    %6 = vector.extract_strided_slice %4 {offsets = [0, 256], sizes = [256, 256], strides = [1, 1]} : vector<256x512xf32> to vector<256x256xf32>
    %7 = arith.maximumf %5, %6 : vector<256x256xf32>
    %8 = arith.truncf %7 : vector<256x256xf32> to vector<256x256xbf16>
    %c0_4 = arith.constant 0 : index
    %c0_5 = arith.constant 0 : index
    %9 = vector.load %arg3[%c0_4, %c0_5] : memref<256x256xbf16, #tpu.memory_space<vmem>>, vector<256x256xbf16>
    %cst_6 = arith.constant dense<0.000000e+00> : vector<256x256xf32>
    %10 = tpu.matmul %8, %9, %cst_6 {dimension_numbers = #tpu.dot_dimension_numbers<[1], [0], [0], [1], [0, 0, 1, 1], [], []>} : vector<256x256xbf16>, vector<256x256xbf16>, vector<256x256xf32> -> vector<256x256xf32>
    %11 = vector.extract_strided_slice %10 {offsets = [0, 0], sizes = [256, 128], strides = [1, 1]} : vector<256x256xf32> to vector<256x128xf32>
    %cst_7 = arith.constant 0.000000e+00 : f32
    %12 = vector.broadcast %cst_7 : f32 to vector<256x128xf32>
    %13 = arith.maximumf %11, %12 : vector<256x128xf32>
    %14 = vector.extract_strided_slice %10 {offsets = [0, 128], sizes = [256, 128], strides = [1, 1]} : vector<256x256xf32> to vector<256x128xf32>
    %cst_8 = arith.constant 0.000000e+00 : f32
    %15 = vector.broadcast %cst_8 : f32 to vector<256x128xf32>
    %16 = arith.maximumf %14, %15 : vector<256x128xf32>
    %17 = arith.maximumf %13, %16 : vector<256x128xf32>
    %18 = arith.truncf %17 : vector<256x128xf32> to vector<256x128xbf16>
    %c0_9 = arith.constant 0 : index
    %c0_10 = arith.constant 0 : index
    %19 = vector.load %arg4[%c0_9, %c0_10] : memref<128x128xbf16, #tpu.memory_space<vmem>>, vector<128x128xbf16>
    %cst_11 = arith.constant dense<0.000000e+00> : vector<256x128xf32>
    %20 = tpu.matmul %18, %19, %cst_11 {dimension_numbers = #tpu.dot_dimension_numbers<[1], [0], [0], [1], [0, 0, 1, 1], [], []>} : vector<256x128xbf16>, vector<128x128xbf16>, vector<256x128xf32> -> vector<256x128xf32>
    %c0_12 = arith.constant 0 : index
    %c0_13 = arith.constant 0 : index
    %21 = vector.load %arg5[%c0_12, %c0_13] : memref<256x128xf32, #tpu.memory_space<vmem>>, vector<256x128xf32>
    tpu.vector_store %arg5[%c0_12, %c0_13], %20 {strides = array<i32>} : memref<256x128xf32, #tpu.memory_space<vmem>>, vector<256x128xf32>,
    return
  }
  func.func @transform_0(%arg0: i32) -> (i32, i32) {
    %c0_i32 = arith.constant 0 : i32
    %c0_i32_0 = arith.constant 0 : i32
    return %arg0, %c0_i32 : i32, i32
  }
  func.func @transform_1(%arg0: i32) -> (i32, i32) {
    %c0_i32 = arith.constant 0 : i32
    %c0_i32_0 = arith.constant 0 : i32
    %c0_i32_1 = arith.constant 0 : i32
    return %c0_i32, %c0_i32_0 : i32, i32
  }
  func.func @transform_2(%arg0: i32) -> (i32, i32) {
    %c0_i32 = arith.constant 0 : i32
    %c0_i32_0 = arith.constant 0 : i32
    %c0_i32_1 = arith.constant 0 : i32
    return %c0_i32, %c0_i32_0 : i32, i32
  }
  func.func @transform_3(%arg0: i32) -> (i32, i32) {
    %c0_i32 = arith.constant 0 : i32
    %c0_i32_0 = arith.constant 0 : i32
    %c0_i32_1 = arith.constant 0 : i32
    return %c0_i32, %c0_i32_0 : i32, i32
  }
  func.func @transform_4(%arg0: i32) -> (i32, i32) {
    %c0_i32 = arith.constant 0 : i32
    %c0_i32_0 = arith.constant 0 : i32
    return %arg0, %c0_i32 : i32, i32
  }
}

</mosaic_0001>

<bundles_post_ra>
// kernel: simple_cnn_forward.1
= control target key start
LH: loop header
LB: loop body
LE: loop exit
PB: predicated region body
PF: predicated region fallthrough
CT: control target
= control target key end

     0   :  { %s2213_s15 = smov 0   ;;  %s2714_s0 = inlined_call_operand.vmem [shape: bf16[512,64], index: 0, kind: input, shape index: {}]   ;;  %s2715_s1 = inlined_call_operand.vmem [shape: bf16[64,512], index: 1, kind: input, shape index: {}]   ;;  %s2716_s2 = inlined_call_operand.vmem [shape: bf16[256,256], index: 2, kind: input, shape index: {}]   ;;  %s2717_s3 = inlined_call_operand.vmem [shape: bf16[128,128], index: 3, kind: input, shape index: {}]   ;;  %s2718_s4 = inlined_call_operand.vmem [shape: f32[512,128], index: 4, kind: output, shape index: {}]  }
   0x1 LB: > { %s1879_s16 = sadd.s32 4294967295, %s2185_s15   ;;  %p1883_p0 = scmp.ge.s32.totalorder %s2185_s15, 1  ;;  %s2185_s15 = sphi %s2213_s15, %s14_s15  }
   0x2   : > { %p163_p1 = scmp.lt.s32.totalorder %s2185_s15, 3 }
   0x4   : > { %p164_p2 = pnand %p1883_p0, %p163_p1 }
   0x5   : > { %v2083_v0 = vld [vmem:[%s2715_s1 + $0x4] ss:$16 sps:$4 sm:$0xff] (!%p164_p2)   ;;  %s1884_s19 = sshll.u32 (!%p164_p2), %s1879_s16, 5  ;;  %v2085_v1 = vld [vmem:[%s2715_s1] ss:$16 sps:$4 sm:$0xff] (!%p164_p2)   ;;  %v2187_v2 = vmov (!%p164_p2), 0  }
   0x6   : > { %167 = sbr.rel (%p164_p2) target bundleno = 834 (0x342), region = 36  ;;  %611 = vmatprep.mubr.bf16.mxu1 (!%p164_p2), %v2187_v2  ;;  %p190_p3 = scmp.lt.s32.totalorder (!%p164_p2), %s1884_s19, 63  ;;  %491 = vmatprep.mubr.bf16.mxu0 (!%p164_p2), %v2187_v2  ;;  %v2086_v3 = vld [vmem:[%s2715_s1 + $0x24] ss:$16 sps:$4 sm:$0xff] (!%p164_p2)   ;;  %v2088_v4 = vld [vmem:[%s2715_s1 + $0x20] ss:$16 sps:$4 sm:$0xff] (!%p164_p2)  }
   0x7   : > { %2066 = vmatprep.subr.bf16.mxu1 (!%p164_p2), %v2083_v0  ;;  %459 = vmatprep.subr.bf16.mxu0 (!%p164_p2), %v2083_v0  ;;  %v2089_v5 = vld [vmem:[%s2715_s1 + $0x44] ss:$16 sps:$4 sm:$0xff] (!%p164_p2)   ;;  %v2091_v6 = vld [vmem:[%s2715_s1 + $0x40] ss:$16 sps:$4 sm:$0xff] (!%p164_p2)   ;;  %v2098_v9 = vld [vmem:[%s2715_s1 + $0xc] ss:$16 sps:$4 sm:$0xff] (!%p164_p2)  }
   0x8   : > { %2070 = vmatpush1.bf16.msra.mxu1 (!%p164_p2), %v2085_v1  ;;  %460 = vmatpush1.bf16.msra.mxu0 (!%p164_p2), %v2085_v1  ;;  %v2092_v7 = vld [vmem:[%s2715_s1 + $0x64] ss:$16 sps:$4 sm:$0xff] (!%p164_p2)   ;;  %v2094_v8 = vld [vmem:[%s2715_s1 + $0x60] ss:$16 sps:$4 sm:$0xff] (!%p164_p2)   ;;  %v2096_v11 = vld [vmem:[%s2715_s1 + $0x8] ss:$16 sps:$4 sm:$0xff] (!%p164_p2)  }
   0x9   : > { %2067 = vmatprep.subr.bf16.mxu1 (!%p164_p2), %v2086_v3  ;;  %461 = vmatprep.subr.bf16.mxu0 (!%p164_p2), %v2086_v3  ;;  %vm410_vm0 = vcmask (!%p164_p2), 523264   ;;  %v2102_v13 = vld [vmem:[%s2715_s1 + $0x2c] ss:$16 sps:$4 sm:$0xff] (!%p164_p2)   ;;  %v2100_v14 = vld [vmem:[%s2715_s1 + $0x28] ss:$16 sps:$4 sm:$0xff] (!%p164_p2)  }
   0xa   : > { %v2106_v15 = vld [vmem:[%s2715_s1 + $0x4c] ss:$16 sps:$4 sm:$0xff] (!%p164_p2)   ;;  %v2104_v18 = vld [vmem:[%s2715_s1 + $0x48] ss:$16 sps:$4 sm:$0xff] (!%p164_p2)  }
   0xb   : > { %v2110_v19 = vld [vmem:[%s2715_s1 + $0x6c] ss:$16 sps:$4 sm:$0xff] (!%p164_p2)   ;;  %v2108_v20 = vld [vmem:[%s2715_s1 + $0x68] ss:$16 sps:$4 sm:$0xff] (!%p164_p2)  }
   0xc   : > { %2071 = vmatpush1.bf16.msra.mxu1 (!%p164_p2), %v2088_v4  ;;  %462 = vmatpush1.bf16.msra.mxu0 (!%p164_p2), %v2088_v4  ;;  %v2123_v25 = vld [vmem:[%s2716_s2] ss:$8 sps:$4 sm:$0xff] (!%p164_p2)   ;;  %v2125_v26 = vld [vmem:[%s2716_s2 + $0x4] ss:$8 sps:$4 sm:$0xff] (!%p164_p2)   ;;  %v2128_v27 = vld [vmem:[%s2716_s2 + $0x14] ss:$8 sps:$4 sm:$0xff] (!%p164_p2)  }
   0xd   : > { %s2720_s19 = smov (!%p190_p3, %s1884_s19), 63  ;;  %2068 = vmatprep.subr.bf16.mxu1 %v2089_v5  ;;  %463 = vmatprep.subr.bf16.mxu0 %v2089_v5  ;;  %v2126_v28 = vld [vmem:[%s2716_s2 + $0x10] ss:$8 sps:$4 sm:$0xff]   ;;  %v2131_v30 = vld [vmem:[%s2716_s2 + $0x24] ss:$8 sps:$4 sm:$0xff]  }
   0xe   : > { %s1885_s28 = sshll.u32 %s2720_s19, 2  ;;  %v2129_v31 = vld [vmem:[%s2716_s2 + $0x20] ss:$8 sps:$4 sm:$0xff]   ;;  %v2134_v32 = vld [vmem:[%s2716_s2 + $0x34] ss:$8 sps:$4 sm:$0xff]   ;;  %s1887_s14 = sshll.u32 %s2720_s19, 3 }
   0xf   : > { %s2244_s5 = scalar_lea.vmem %s2714_s0, %s1885_s28  ;;  %v2132_v33 = vld [vmem:[%s2716_s2 + $0x30] ss:$8 sps:$4 sm:$0xff]   ;;  %v2137_v35 = vld [vmem:[%s2716_s2 + $0x44] ss:$8 sps:$4 sm:$0xff]   ;;  %v2135_v36 = vld [vmem:[%s2716_s2 + $0x40] ss:$8 sps:$4 sm:$0xff]   ;;  %s2677_s18 = scalar_lea.vmem %s2718_s4, %s1887_s14 }
  0x10   : > { %2072 = vmatpush1.bf16.msra.mxu1 %v2091_v6  ;;  %464 = vmatpush1.bf16.msra.mxu0 %v2091_v6  ;;  %v2259_v10 = vld [vmem:[%s2244_s5 + $0x60] sm:$0xff]   ;;  %v2280_v16 = vld [vmem:[%s2244_s5 + $0x68] sm:$0xff]   ;;  %v2297_v21 = vld [vmem:[%s2244_s5 + $0x70] sm:$0xff]  }
  0x11   : > { %2069 = vmatprep.subr.bf16.mxu1 %v2092_v7  ;;  %465 = vmatprep.subr.bf16.mxu0 %v2092_v7  ;;  %v2111_v12 = vld [vmem:[%s2244_s5] sm:$0xff]   ;;  %v2112_v17 = vld [vmem:[%s2244_s5 + $0x8] sm:$0xff]   ;;  %v2113_v22 = vld [vmem:[%s2244_s5 + $0x10] sm:$0xff]  }
  0x12   : > { %v2307_v23 = vld [vmem:[%s2244_s5 + $0x78] sm:$0xff]   ;;  %v2115_v29 = vld [vmem:[%s2244_s5 + $0x20] sm:$0xff]   ;;  %v2116_v34 = vld [vmem:[%s2244_s5 + $0x28] sm:$0xff]  }
  0x13   : > { %v2114_v24 = vld [vmem:[%s2244_s5 + $0x18] sm:$0xff]   ;;  %v2117_v39 = vld [vmem:[%s2244_s5 + $0x30] sm:$0xff]   ;;  %v2143_v40 = vld [vmem:[%s2716_s2 + $0x64] ss:$8 sps:$4 sm:$0xff]  }
  0x14   : > { %2073 = vmatpush1.bf16.msra.mxu1 %v2094_v8  ;;  %466 = vmatpush1.bf16.msra.mxu0 %v2094_v8  ;;  %v2140_v37 = vld [vmem:[%s2716_s2 + $0x54] ss:$8 sps:$4 sm:$0xff]   ;;  %v2138_v38 = vld [vmem:[%s2716_s2 + $0x50] ss:$8 sps:$4 sm:$0xff]   ;;  %v2141_v41 = vld [vmem:[%s2716_s2 + $0x60] ss:$8 sps:$4 sm:$0xff]  }
  0x15   : > { %652 = vmatprep.subr.bf16.mxu1 %v2098_v9  ;;  %1261 = vmatprep.subr.bf16.mxu0 %v2125_v26  ;;  %v2146_v42 = vld [vmem:[%s2716_s2 + $0x74] ss:$8 sps:$4 sm:$0xff]   ;;  %v2144_v43 = vld [vmem:[%s2716_s2 + $0x70] ss:$8 sps:$4 sm:$0xff]   ;;  %v2149_v45 = vld [vmem:[%s2716_s2 + $0x84] ss:$8 sps:$4 sm:$0xff]  }
  0x16   : > { %v2118_v44 = vld [vmem:[%s2244_s5 + $0x38] sm:$0xff]   ;;  %v2147_v46 = vld [vmem:[%s2716_s2 + $0x80] ss:$8 sps:$4 sm:$0xff]   ;;  %v2121_v49 = vld [vmem:[%s2244_s5 + $0x50] sm:$0xff]  }
  0x17   : > { %1932 = vmatmul.mubr.msk.bf16.vlgmr.msra.gmra.mrb[0].mxu1 %vm410_vm0, %v2259_v10  ;;  %1920 = vmatmul.mubr.msk.bf16.vlgmr.msra.gmra.mrb[0].mxu0 %vm410_vm0, %v2111_v12  ;;  %v2119_v47 = vld [vmem:[%s2244_s5 + $0x40] sm:$0xff]   ;;  %v2120_v48 = vld [vmem:[%s2244_s5 + $0x48] sm:$0xff]   ;;  %v2122_v50 = vld [vmem:[%s2244_s5 + $0x58] sm:$0xff]  }
  0x18   : > { %653 = vmatpush1.bf16.msra.mxu1 %v2096_v11  ;;  %621 = vmatprep.mubr.bf16.mxu1 %v2187_v2  ;;  %v2150_v51 = vld [vmem:[%s2716_s2 + $0x90] ss:$8 sps:$4 sm:$0xff]   ;;  %v2152_v52 = vld [vmem:[%s2716_s2 + $0x94] ss:$8 sps:$4 sm:$0xff]   ;;  %v2155_v53 = vld [vmem:[%s2716_s2 + $0xa4] ss:$8 sps:$4 sm:$0xff]  }
  0x19   : > { %654 = vmatprep.subr.bf16.mxu1 %v2102_v13  ;;  %501 = vmatprep.mubr.bf16.mxu0 %v2187_v2  ;;  %v2153_v54 = vld [vmem:[%s2716_s2 + $0xa0] ss:$8 sps:$4 sm:$0xff]   ;;  %v2156_v55 = vld [vmem:[%s2716_s2 + $0xb0] ss:$8 sps:$4 sm:$0xff]   ;;  %v2158_v56 = vld [vmem:[%s2716_s2 + $0xb4] ss:$8 sps:$4 sm:$0xff]  }
  0x1a   : > { %1262 = vmatpush1.bf16.msra.mxu0 %v2123_v25  ;;  %v2159_v57 = vld [vmem:[%s2716_s2 + $0xc0] ss:$8 sps:$4 sm:$0xff]   ;;  %v2161_v58 = vld [vmem:[%s2716_s2 + $0xc4] ss:$8 sps:$4 sm:$0xff]   ;;  %v2162_v59 = vld [vmem:[%s2716_s2 + $0xd0] ss:$8 sps:$4 sm:$0xff]  }
  0x1b   : > { %1263 = vmatprep.subr.bf16.mxu0 %v2128_v27  ;;  %v2164_v60 = vld [vmem:[%s2716_s2 + $0xd4] ss:$8 sps:$4 sm:$0xff]   ;;  %v2167_v61 = vld [vmem:[%s2716_s2 + $0xe4] ss:$8 sps:$4 sm:$0xff]   ;;  %v2165_v62 = vld [vmem:[%s2716_s2 + $0xe0] ss:$8 sps:$4 sm:$0xff]  }
  0x1c   : > { %655 = vmatpush1.bf16.msra.mxu1 %v2100_v14  ;;  %v2170_v63 = vld [vmem:[%s2716_s2 + $0xf4] ss:$8 sps:$4 sm:$0xff]   ;;  %v2168_v0 = vld [vmem:[%s2716_s2 + $0xf0] ss:$8 sps:$4 sm:$0xff]  }
  0x1d   : > { %656 = vmatprep.subr.bf16.mxu1 %v2106_v15 }
  0x1e   : > { %1264 = vmatpush1.bf16.msra.mxu0 %v2126_v28 }
  0x1f   : > { %1933 = vmatmul.mubr.msk.bf16.gmra.mrb[4].mxu1 %vm410_vm0, %v2280_v16  ;;  %1921 = vmatmul.mubr.msk.bf16.gmra.mrb[4].mxu0 %vm410_vm0, %v2112_v17 }
  0x20   : > { %631 = vmatprep.mubr.bf16.mxu1 %v2187_v2  ;;  %657 = vmatpush1.bf16.msra.mxu1 %v2104_v18 }
  0x21   : > { %658 = vmatprep.subr.bf16.mxu1 %v2110_v19  ;;  %511 = vmatprep.mubr.bf16.mxu0 %v2187_v2 }
  0x22   : > { %1265 = vmatprep.subr.bf16.mxu0 %v2131_v30 }
  0x23   : > { %1266 = vmatpush1.bf16.msra.mxu0 %v2129_v31 }
  0x24   : > { %659 = vmatpush1.bf16.msra.mxu1 %v2108_v20  ;;  %1267 = vmatprep.subr.bf16.mxu0 %v2134_v32 }
  0x27   : > { %1934 = vmatmul.mubr.msk.bf16.gmra.mrb[8].mxu1 %vm410_vm0, %v2297_v21  ;;  %1922 = vmatmul.mubr.msk.bf16.gmra.mrb[8].mxu0 %vm410_vm0, %v2113_v22 }
  0x28   : > { %641 = vmatprep.mubr.bf16.mxu1 %v2187_v2  ;;  %521 = vmatprep.mubr.bf16.mxu0 %v2187_v2 }
  0x29   : > { %1268 = vmatpush1.bf16.msra.mxu0 %v2132_v33 }
  0x2a   : > { %1269 = vmatprep.subr.bf16.mxu0 %v2137_v35 }
  0x2d   : > { %1270 = vmatpush1.bf16.msra.mxu0 %v2135_v36 }
  0x2e   : > { %1271 = vmatprep.subr.bf16.mxu0 %v2140_v37 }
  0x2f   : > { %1935 = vmatmul.mubr.msk.bf16.gmra.mrb[12].mxu1 %vm410_vm0, %v2307_v23  ;;  %1923 = vmatmul.mubr.msk.bf16.gmra.mrb[12].mxu0 %vm410_vm0, %v2114_v24 }
  0x30   : > { %684 = vmatprep.mubr.bf16.mxu1 %v2187_v2  ;;  %531 = vmatprep.mubr.bf16.mxu0 %v2187_v2 }
  0x31   : > { %1272 = vmatpush1.bf16.msra.mxu0 %v2138_v38 }
  0x32   : > { %1273 = vmatprep.subr.bf16.mxu0 %v2143_v40 }
  0x35   : > { %1274 = vmatpush1.bf16.msra.mxu0 %v2141_v41 }
  0x36   : > { %1275 = vmatprep.subr.bf16.mxu0 %v2146_v42 }
  0x37   : > { %1936 = vmatmul.mubr.msk.bf16.vlgmr.msra.gmra.mrb[16].mxu1 %vm410_vm0, %v2111_v12  ;;  %1924 = vmatmul.mubr.msk.bf16.gmra.mrb[16].mxu0 %vm410_vm0, %v2115_v29 }
  0x38   : > { %694 = vmatprep.mubr.bf16.mxu1 %v2187_v2  ;;  %541 = vmatprep.mubr.bf16.mxu0 %v2187_v2 }
  0x39   : > { %1276 = vmatpush1.bf16.msra.mxu0 %v2144_v43 }
  0x3a   : > { %1277 = vmatprep.subr.bf16.mxu0 %v2149_v45 }
  0x3d   : > { %1278 = vmatpush1.bf16.msra.mxu0 %v2147_v46 }
  0x3e   : > { %1279 = vmatprep.subr.bf16.mxu0 %v2152_v52 }
  0x3f   : > { %1937 = vmatmul.mubr.msk.bf16.gmra.mrb[20].mxu1 %vm410_vm0, %v2112_v17  ;;  %1925 = vmatmul.mubr.msk.bf16.gmra.mrb[20].mxu0 %vm410_vm0, %v2116_v34 }
  0x40   : > { %704 = vmatprep.mubr.bf16.mxu1 %v2187_v2  ;;  %551 = vmatprep.mubr.bf16.mxu0 %v2187_v2 }
  0x41   : > { %1280 = vmatpush1.bf16.msra.mxu0 %v2150_v51 }
  0x42   : > { %1281 = vmatprep.subr.bf16.mxu0 %v2155_v53 }
  0x45   : > { %1282 = vmatpush1.bf16.msra.mxu0 %v2153_v54 }
  0x46   : > { %1283 = vmatprep.subr.bf16.mxu0 %v2158_v56 }
  0x47   : > { %1938 = vmatmul.mubr.msk.bf16.gmra.mrb[24].mxu1 %vm410_vm0, %v2113_v22  ;;  %1926 = vmatmul.mubr.msk.bf16.gmra.mrb[24].mxu0 %vm410_vm0, %v2117_v39 }
  0x48   : > { %714 = vmatprep.mubr.bf16.mxu1 %v2187_v2  ;;  %561 = vmatprep.mubr.bf16.mxu0 %v2187_v2 }
  0x49   : > { %1284 = vmatpush1.bf16.msra.mxu0 %v2156_v55 }
  0x4a   : > { %1285 = vmatprep.subr.bf16.mxu0 %v2161_v58 }
  0x4d   : > { %1286 = vmatpush1.bf16.msra.mxu0 %v2159_v57  ;;  %v2173_v57 = vld [vmem:[%s2717_s3 + $0x10] sm:$0xff]  }
  0x4e   : > { %1287 = vmatprep.subr.bf16.mxu0 %v2164_v60 }
  0x4f   : > { %1939 = vmatmul.mubr.msk.bf16.gmra.mrb[28].mxu1 %vm410_vm0, %v2114_v24  ;;  %1927 = vmatmul.mubr.msk.bf16.gmra.mrb[28].mxu0 %vm410_vm0, %v2118_v44 }
  0x50   : > { %724 = vmatprep.mubr.bf16.mxu1 %v2187_v2  ;;  %571 = vmatprep.mubr.bf16.mxu0 %v2187_v2 }
  0x51   : > { %1288 = vmatpush1.bf16.msra.mxu0 %v2162_v59 }
  0x52   : > { %1289 = vmatprep.subr.bf16.mxu0 %v2167_v61 }
  0x55   : > { %1290 = vmatpush1.bf16.msra.mxu0 %v2165_v62 }
  0x56   : > { %1291 = vmatprep.subr.bf16.mxu0 %v2170_v63 }
  0x57   : > { %1940 = vmatmul.mubr.msk.bf16.gmra.mrb[32].mxu1 %vm410_vm0, %v2115_v29  ;;  %1928 = vmatmul.mubr.msk.bf16.gmra.mrb[32].mxu0 %vm410_vm0, %v2119_v47 }
  0x58   : > { %734 = vmatprep.mubr.bf16.mxu1 %v2187_v2  ;;  %581 = vmatprep.mubr.bf16.mxu0 %v2187_v2 }
  0x59   : > { %1292 = vmatpush1.bf16.msra.mxu0 %v2168_v0 }
  0x5f   : > { %1941 = vmatmul.mubr.msk.bf16.gmra.mrb[36].mxu1 %vm410_vm0, %v2116_v34  ;;  %1929 = vmatmul.mubr.msk.bf16.gmra.mrb[36].mxu0 %vm410_vm0, %v2120_v48 }
  0x60   : > { %744 = vmatprep.mubr.bf16.mxu1 %v2187_v2  ;;  %591 = vmatprep.mubr.bf16.mxu0 %v2187_v2 }
  0x67   : > { %1942 = vmatmul.mubr.msk.bf16.gmra.mrb[40].mxu1 %vm410_vm0, %v2117_v39  ;;  %1930 = vmatmul.mubr.msk.bf16.gmra.mrb[40].mxu0 %vm410_vm0, %v2121_v49 }
  0x68   : > { %754 = vmatprep.mubr.bf16.mxu1 %v2187_v2  ;;  %601 = vmatprep.mubr.bf16.mxu0 %v2187_v2 }
  0x6f   : > { %1943 = vmatmul.mubr.msk.bf16.gmra.mrb[44].mxu1 %vm410_vm0, %v2118_v44  ;;  %1931 = vmatmul.mubr.msk.bf16.gmra.mrb[44].mxu0 %vm410_vm0, %v2122_v50 }
  0x70   : > { %764 = vmatprep.mubr.bf16.mxu1 %v2187_v2 }
  0x77   : > { %1944 = vmatmul.mubr.msk.bf16.gmra.mrb[48].mxu1 %vm410_vm0, %v2119_v47 }
  0x78   : > { %774 = vmatprep.mubr.bf16.mxu1 %v2187_v2 }
  0x7f   : > { %1945 = vmatmul.mubr.msk.bf16.gmra.mrb[52].mxu1 %vm410_vm0, %v2120_v48  ;;  %v2171_v48 = vld [vmem:[%s2717_s3] sm:$0xff]  }
  0x80   : > { %784 = vmatprep.mubr.bf16.mxu1 %v2187_v2  ;;  %2018 = vmatprep.subr.bf16.mxu1 %v2171_v48 }
  0x81   : > { %2019 = vmatpush3.bf16.msra.mxu1 %v2171_v48 }
  0x87   : > { %1946 = vmatmul.mubr.msk.bf16.gmra.mrb[56].mxu1 %vm410_vm0, %v2121_v49  ;;  %v2172_v49 = vld [vmem:[%s2717_s3 + $0x8] sm:$0xff]  }
  0x88   : > { %794 = vmatprep.mubr.bf16.mxu1 %v2187_v2  ;;  %2020 = vmatprep.subr.bf16.mxu1 %v2172_v49 }
  0x89   : > { %2021 = vmatpush3.bf16.msra.mxu1 %v2172_v49 }
  0x8a   : > { %2022 = vmatprep.subr.bf16.mxu1 %v2173_v57 }
  0x8d   : > { %2023 = vmatpush3.bf16.msra.mxu1 %v2173_v57 }
  0x8f   : > { %1947 = vmatmul.mubr.msk.bf16.gmra.mrb[60].mxu1 %vm410_vm0, %v2122_v50 }
  0x90   : > { %804 = vmatprep.mubr.bf16.mxu1 %v2187_v2 }
  0x97   : > { %1948 = vmatmul.mubr.msk.bf16.gmra.mrb[64].mxu1 %vm410_vm0, %v2259_v10 }
  0x98   : > { %814 = vmatprep.mubr.bf16.mxu1 %v2187_v2 }
  0x9f   : > { %1949 = vmatmul.mubr.msk.bf16.gmra.mrb[68].mxu1 %vm410_vm0, %v2280_v16 }
  0xa0   : > { %824 = vmatprep.mubr.bf16.mxu1 %v2187_v2 }
  0xa7   : > { %1950 = vmatmul.mubr.msk.bf16.gmra.mrb[72].mxu1 %vm410_vm0, %v2297_v21 }
  0xa8   : > { %834 = vmatprep.mubr.bf16.mxu1 %v2187_v2 }
  0xaf   : > { %1951 = vmatmul.mubr.msk.bf16.gmra.mrb[76].mxu1 %vm410_vm0, %v2307_v23 }
  0xea   : > { %v2469_v1 = vpop.f32.mrb[0].mxu1  ;;  %v493_v3 = vpop.f32.mrb[0].mxu0 }
  0xeb   : > { %v2471_v4 = vpop.f32.mrb[1].mxu1  ;;  %v495_v5 = vpop.f32.mrb[1].mxu0  ;;  %v845_v33 = vmax.f32 %v493_v3, 0.0 }
  0xec   : > { %v2473_v6 = vpop.f32.mrb[2].mxu1  ;;  %v497_v7 = vpop.f32.mrb[2].mxu0  ;;  %v846_v34 = vmax.f32 %v495_v5, 0.0 }
  0xed   : > { %v2475_v8 = vpop.f32.mrb[3].mxu1  ;;  %v499_v9 = vpop.f32.mrb[3].mxu0  ;;  %v849_v43 = vmax.f32 %v497_v7, 0.0 }
  0xee   : > { %v850_v50 = vmax.f32 %v499_v9, 0.0 }
  0xf2   : > { %v2477_v10 = vpop.f32.mrb[4].mxu1  ;;  %v2479_v11 = vpop.f32.mrb[4].mxu0 }
  0xf3   : > { %v2481_v2 = vpop.f32.mrb[5].mxu1  ;;  %v2483_v12 = vpop.f32.mrb[5].mxu0  ;;  %v853_v56 = vmax.f32 %v2479_v11, 0.0 }
  0xf4   : > { %v2485_v13 = vpop.f32.mrb[6].mxu1  ;;  %v2487_v14 = vpop.f32.mrb[6].mxu0  ;;  %v854_v58 = vmax.f32 %v2483_v12, 0.0 }
  0xf5   : > { %v2489_v15 = vpop.f32.mrb[7].mxu1  ;;  %v2491_v16 = vpop.f32.mrb[7].mxu0  ;;  %v857_v9 = vmax.f32 %v2487_v14, 0.0 }
  0xfa   : > { %v2493_v17 = vpop.f32.mrb[8].mxu1  ;;  %v2495_v18 = vpop.f32.mrb[8].mxu0 }
  0xfb   : > { %v2497_v19 = vpop.f32.mrb[9].mxu1  ;;  %v2499_v20 = vpop.f32.mrb[9].mxu0  ;;  %v861_v14 = vmax.f32 %v2495_v18, 0.0 }
  0xfc   : > { %v2501_v21 = vpop.f32.mrb[10].mxu1  ;;  %v2503_v22 = vpop.f32.mrb[10].mxu0 }
  0xfd   : > { %v2505_v23 = vpop.f32.mrb[11].mxu1  ;;  %v2507_v24 = vpop.f32.mrb[11].mxu0  ;;  %v865_v18 = vmax.f32 %v2503_v22, 0.0 }
 0x102   : > { %v2509_v25 = vpop.f32.mrb[12].mxu1  ;;  %v2511_v26 = vpop.f32.mrb[12].mxu0 }
 0x103   : > { %v2513_v27 = vpop.f32.mrb[13].mxu1  ;;  %v2515_v28 = vpop.f32.mrb[13].mxu0 }
 0x104   : > { %v2517_v29 = vpop.f32.mrb[14].mxu1  ;;  %v2519_v30 = vpop.f32.mrb[14].mxu0 }
 0x105   : > { %v2521_v31 = vpop.f32.mrb[15].mxu1  ;;  %v2523_v32 = vpop.f32.mrb[15].mxu0 }
 0x10a   : > { %v686_v35 = vpop.f32.mrb[16].mxu1  ;;  %v2525_v36 = vpop.f32.mrb[16].mxu0 }
 0x10b   : > { %v847_v37 = vmax.f32 %v686_v35, 0.0  ;;  %v688_v38 = vpop.f32.mrb[17].mxu1  ;;  %v2527_v39 = vpop.f32.mrb[17].mxu0  ;;  %v2174_v35 = vld [vmem:[%s2717_s3 + $0x18] sm:$0xff]  }
 0x10c   : > { %v848_v40 = vmax.f32 %v688_v38, 0.0  ;;  %v690_v41 = vpop.f32.mrb[18].mxu1  ;;  %v2529_v42 = vpop.f32.mrb[18].mxu0  ;;  %2024 = vmatprep.subr.bf16.mxu1 %v2174_v35 }
 0x10d   : > { %v973_v44 = vmax.f32 %v845_v33, %v847_v37  ;;  %v851_v45 = vmax.f32 %v690_v41, 0.0  ;;  %v692_v46 = vpop.f32.mrb[19].mxu1  ;;  %v2531_v47 = vpop.f32.mrb[19].mxu0  ;;  %v858_v37 = vmax.f32 %v2491_v16, 0.0  ;;  %2025 = vmatpush3.bf16.msra.mxu1 %v2174_v35 }
 0x10e   : > { %v974_v51 = vmax.f32 %v846_v34, %v848_v40  ;;  %v852_v52 = vmax.f32 %v692_v46, 0.0 }
 0x10f   : > { %v975_v53 = vmax.f32 %v849_v43, %v851_v45  ;;  %v862_v45 = vmax.f32 %v2499_v20, 0.0 }
 0x110   : > { %v976_v54 = vmax.f32 %v850_v50, %v852_v52 }
 0x111   : > { %v1037_v55 = vpack.c.bf16 %v975_v53, %v973_v44 }
 0x112   : > { %v696_v59 = vpop.f32.mrb[20].mxu1  ;;  %v1038_v60 = vpack.c.bf16 %v976_v54, %v974_v51  ;;  %v2544_v61 = vpop.f32.mrb[20].mxu0 }
 0x113   : > { %v855_v62 = vmax.f32 %v696_v59, 0.0  ;;  %v698_v63 = vpop.f32.mrb[21].mxu1  ;;  %v2546_v0 = vpop.f32.mrb[21].mxu0 }
 0x114   : > { %v856_v3 = vmax.f32 %v698_v63, 0.0  ;;  %v700_v5 = vpop.f32.mrb[22].mxu1  ;;  %1293 = vmatprep.mubr.bf16.mxu0 %v1038_v60  ;;  %v2548_v7 = vpop.f32.mrb[22].mxu0 }
 0x115   : > { %v977_v11 = vmax.f32 %v853_v56, %v855_v62  ;;  %v859_v33 = vmax.f32 %v700_v5, 0.0  ;;  %v702_v34 = vpop.f32.mrb[23].mxu1  ;;  %1294 = vmatmul.mubr.bf16.vlgmr.msra.gmra.mrb[48].mxu0 %v1037_v55  ;;  %v2551_v12 = vpop.f32.mrb[23].mxu0 }
 0x116   : > { %v978_v38 = vmax.f32 %v854_v58, %v856_v3  ;;  %v860_v40 = vmax.f32 %v702_v34, 0.0  ;;  %v866_v58 = vmax.f32 %v2507_v24, 0.0  ;;  %v869_v3 = vmax.f32 %v2511_v26, 0.0 }
 0x117   : > { %v979_v41 = vmax.f32 %v857_v9, %v859_v33  ;;  %v870_v9 = vmax.f32 %v2515_v28, 0.0 }
 0x118   : > { %v980_v43 = vmax.f32 %v858_v37, %v860_v40 }
 0x119   : > { %v1039_v44 = vpack.c.bf16 %v979_v41, %v977_v11  ;;  %v873_v41 = vmax.f32 %v2519_v30, 0.0 }
 0x11a   : > { %v706_v46 = vpop.f32.mrb[24].mxu1  ;;  %v1040_v48 = vpack.c.bf16 %v980_v43, %v978_v38  ;;  %v2559_v49 = vpop.f32.mrb[24].mxu0 }
 0x11b   : > { %v863_v50 = vmax.f32 %v706_v46, 0.0  ;;  %v708_v51 = vpop.f32.mrb[25].mxu1  ;;  %v2561_v52 = vpop.f32.mrb[25].mxu0 }
 0x11c   : > { %v864_v16 = vmax.f32 %v708_v51, 0.0  ;;  %v710_v53 = vpop.f32.mrb[26].mxu1  ;;  %1303 = vmatprep.mubr.bf16.mxu0 %v1040_v48  ;;  %v2563_v54 = vpop.f32.mrb[26].mxu0  ;;  %v877_v51 = vmax.f32 %v2525_v36, 0.0 }
 0x11d   : > { %v981_v55 = vmax.f32 %v861_v14, %v863_v50  ;;  %v867_v56 = vmax.f32 %v710_v53, 0.0  ;;  %v712_v57 = vpop.f32.mrb[27].mxu1  ;;  %1304 = vmatmul.mubr.bf16.gmra.mrb[52].mxu0 %v1039_v44  ;;  %v2566_v20 = vpop.f32.mrb[27].mxu0  ;;  %v874_v44 = vmax.f32 %v2523_v32, 0.0  ;;  %v878_v53 = vmax.f32 %v2527_v39, 0.0 }
 0x11e   : > { %v982_v59 = vmax.f32 %v862_v45, %v864_v16  ;;  %v868_v60 = vmax.f32 %v712_v57, 0.0 }
 0x11f   : > { %v983_v62 = vmax.f32 %v865_v18, %v867_v56 }
 0x120   : > { %v984_v63 = vmax.f32 %v866_v58, %v868_v60 }
 0x121   : > { %v1041_v5 = vpack.c.bf16 %v983_v62, %v981_v55  ;;  %v881_v62 = vmax.f32 %v2529_v42, 0.0 }
 0x122   : > { %v716_v11 = vpop.f32.mrb[28].mxu1  ;;  %v1042_v33 = vpack.c.bf16 %v984_v63, %v982_v59  ;;  %v2571_v22 = vpop.f32.mrb[28].mxu0 }
 0x123   : > { %v871_v34 = vmax.f32 %v716_v11, 0.0  ;;  %v718_v35 = vpop.f32.mrb[29].mxu1  ;;  %v2573_v37 = vpop.f32.mrb[29].mxu0 }
 0x124   : > { %v872_v38 = vmax.f32 %v718_v35, 0.0  ;;  %v720_v40 = vpop.f32.mrb[30].mxu1  ;;  %1313 = vmatprep.mubr.bf16.mxu0 %v1042_v33  ;;  %v2575_v24 = vpop.f32.mrb[30].mxu0  ;;  %v885_v35 = vmax.f32 %v2544_v61, 0.0 }
 0x125   : > { %v985_v43 = vmax.f32 %v869_v3, %v871_v34  ;;  %v875_v26 = vmax.f32 %v720_v40, 0.0  ;;  %v722_v14 = vpop.f32.mrb[31].mxu1  ;;  %1314 = vmatmul.mubr.bf16.gmra.mrb[56].mxu0 %v1041_v5  ;;  %v2578_v28 = vpop.f32.mrb[31].mxu0  ;;  %v882_v5 = vmax.f32 %v2531_v47, 0.0  ;;  %v886_v40 = vmax.f32 %v2546_v0, 0.0 }
 0x126   : > { %v986_v45 = vmax.f32 %v870_v9, %v872_v38  ;;  %v876_v46 = vmax.f32 %v722_v14, 0.0 }
 0x127   : > { %v987_v48 = vmax.f32 %v873_v41, %v875_v26 }
 0x128   : > { %v988_v50 = vmax.f32 %v874_v44, %v876_v46 }
 0x129   : > { %v1043_v16 = vpack.c.bf16 %v987_v48, %v985_v43  ;;  %v889_v48 = vmax.f32 %v2548_v7, 0.0 }
 0x12a   : > { %v726_v18 = vpop.f32.mrb[32].mxu1  ;;  %v1044_v55 = vpack.c.bf16 %v988_v50, %v986_v45  ;;  %v2583_v30 = vpop.f32.mrb[32].mxu0 }
 0x12b   : > { %v879_v56 = vmax.f32 %v726_v18, 0.0  ;;  %v728_v57 = vpop.f32.mrb[33].mxu1  ;;  %v2585_v58 = vpop.f32.mrb[33].mxu0 }
 0x12c   : > { %v880_v59 = vmax.f32 %v728_v57, 0.0  ;;  %v730_v60 = vpop.f32.mrb[34].mxu1  ;;  %1323 = vmatprep.mubr.bf16.mxu0 %v1044_v55  ;;  %v2587_v32 = vpop.f32.mrb[34].mxu0  ;;  %v893_v57 = vmax.f32 %v2559_v49, 0.0 }
 0x12d   : > { %v989_v63 = vmax.f32 %v877_v51, %v879_v56  ;;  %v883_v36 = vmax.f32 %v730_v60, 0.0  ;;  %v732_v3 = vpop.f32.mrb[35].mxu1  ;;  %1324 = vmatmul.mubr.bf16.gmra.mrb[60].mxu0 %v1043_v16  ;;  %v2590_v39 = vpop.f32.mrb[35].mxu0  ;;  %v890_v16 = vmax.f32 %v2551_v12, 0.0  ;;  %v894_v60 = vmax.f32 %v2561_v52, 0.0 }
 0x12e   : > { %v990_v9 = vmax.f32 %v878_v53, %v880_v59  ;;  %v884_v11 = vmax.f32 %v732_v3, 0.0 }
 0x12f   : > { %v991_v33 = vmax.f32 %v881_v62, %v883_v36 }
 0x130   : > { %v992_v34 = vmax.f32 %v882_v5, %v884_v11 }
 0x131   : > { %v1045_v38 = vpack.c.bf16 %v991_v33, %v989_v63  ;;  %v897_v33 = vmax.f32 %v2563_v54, 0.0 }
 0x132   : > { %v736_v41 = vpop.f32.mrb[36].mxu1  ;;  %v1046_v43 = vpack.c.bf16 %v992_v34, %v990_v9  ;;  %v2595_v42 = vpop.f32.mrb[36].mxu0 }
 0x133   : > { %v887_v26 = vmax.f32 %v736_v41, 0.0  ;;  %v738_v14 = vpop.f32.mrb[37].mxu1  ;;  %v2597_v44 = vpop.f32.mrb[37].mxu0 }
 0x134   : > { %v888_v45 = vmax.f32 %v738_v14, 0.0  ;;  %v740_v46 = vpop.f32.mrb[38].mxu1  ;;  %1333 = vmatprep.mubr.bf16.mxu0 %v1046_v43  ;;  %v2599_v47 = vpop.f32.mrb[38].mxu0  ;;  %v901_v14 = vmax.f32 %v2571_v22, 0.0 }
 0x135   : > { %v993_v50 = vmax.f32 %v885_v35, %v887_v26  ;;  %v891_v61 = vmax.f32 %v740_v46, 0.0  ;;  %v742_v51 = vpop.f32.mrb[39].mxu1  ;;  %1334 = vmatmul.mubr.bf16.gmra.mrb[64].mxu0 %v1045_v38  ;;  %v2602_v0 = vpop.f32.mrb[39].mxu0  ;;  %v898_v38 = vmax.f32 %v2566_v20, 0.0  ;;  %v902_v46 = vmax.f32 %v2573_v37, 0.0 }
 0x136   : > { %v994_v53 = vmax.f32 %v886_v40, %v888_v45  ;;  %v892_v18 = vmax.f32 %v742_v51, 0.0 }
 0x137   : > { %v995_v55 = vmax.f32 %v889_v48, %v891_v61 }
 0x138   : > { %v996_v56 = vmax.f32 %v890_v16, %v892_v18 }
 0x139   : > { %v1047_v59 = vpack.c.bf16 %v995_v55, %v993_v50  ;;  %v905_v55 = vmax.f32 %v2575_v24, 0.0 }
 0x13a   : > { %v746_v62 = vpop.f32.mrb[40].mxu1  ;;  %v1048_v63 = vpack.c.bf16 %v996_v56, %v994_v53  ;;  %v2607_v7 = vpop.f32.mrb[40].mxu0 }
 0x13b   : > { %v895_v36 = vmax.f32 %v746_v62, 0.0  ;;  %v748_v3 = vpop.f32.mrb[41].mxu1  ;;  %v2609_v5 = vpop.f32.mrb[41].mxu0 }
 0x13c   : > { %v896_v9 = vmax.f32 %v748_v3, 0.0  ;;  %v750_v11 = vpop.f32.mrb[42].mxu1  ;;  %1343 = vmatprep.mubr.bf16.mxu0 %v1048_v63  ;;  %v2611_v12 = vpop.f32.mrb[42].mxu0  ;;  %v909_v3 = vmax.f32 %v2583_v30, 0.0 }
 0x13d   : > { %v997_v34 = vmax.f32 %v893_v57, %v895_v36  ;;  %v899_v49 = vmax.f32 %v750_v11, 0.0  ;;  %v752_v35 = vpop.f32.mrb[43].mxu1  ;;  %1344 = vmatmul.mubr.bf16.gmra.mrb[68].mxu0 %v1047_v59  ;;  %v2614_v52 = vpop.f32.mrb[43].mxu0  ;;  %v906_v59 = vmax.f32 %v2578_v28, 0.0  ;;  %v910_v11 = vmax.f32 %v2585_v58, 0.0 }
 0x13e   : > { %v998_v40 = vmax.f32 %v894_v60, %v896_v9  ;;  %v900_v41 = vmax.f32 %v752_v35, 0.0  ;;  %v917_v58 = vmax.f32 %v2595_v42, 0.0 }
 0x13f   : > { %v999_v43 = vmax.f32 %v897_v33, %v899_v49 }
 0x140   : > { %v1000_v26 = vmax.f32 %v898_v38, %v900_v41 }
 0x141   : > { %v1049_v45 = vpack.c.bf16 %v999_v43, %v997_v34 }
 0x142   : > { %v756_v48 = vpop.f32.mrb[44].mxu1  ;;  %v1050_v50 = vpack.c.bf16 %v1000_v26, %v998_v40  ;;  %v2619_v54 = vpop.f32.mrb[44].mxu0  ;;  %v913_v40 = vmax.f32 %v2587_v32, 0.0  ;;  %v914_v26 = vmax.f32 %v2590_v39, 0.0 }
 0x143   : > { %v903_v61 = vmax.f32 %v756_v48, 0.0  ;;  %v758_v51 = vpop.f32.mrb[45].mxu1  ;;  %v2621_v16 = vpop.f32.mrb[45].mxu0 }
 0x144   : > { %v904_v53 = vmax.f32 %v758_v51, 0.0  ;;  %v760_v18 = vpop.f32.mrb[46].mxu1  ;;  %1353 = vmatprep.mubr.bf16.mxu0 %v1050_v50  ;;  %v2623_v20 = vpop.f32.mrb[46].mxu0  ;;  %v918_v50 = vmax.f32 %v2597_v44, 0.0  ;;  %v925_v44 = vmax.f32 %v2607_v7, 0.0 }
 0x145   : > { %v1001_v56 = vmax.f32 %v901_v14, %v903_v61  ;;  %v907_v22 = vmax.f32 %v760_v18, 0.0  ;;  %v762_v57 = vpop.f32.mrb[47].mxu1  ;;  %1354 = vmatmul.mubr.bf16.gmra.mrb[72].mxu0 %v1049_v45  ;;  %v2626_v37 = vpop.f32.mrb[47].mxu0 }
 0x146   : > { %v1002_v60 = vmax.f32 %v902_v46, %v904_v53  ;;  %v908_v62 = vmax.f32 %v762_v57, 0.0 }
 0x147   : > { %v1003_v63 = vmax.f32 %v905_v55, %v907_v22 }
 0x148   : > { %v1004_v36 = vmax.f32 %v906_v59, %v908_v62  ;;  %v922_v59 = vmax.f32 %v2602_v0, 0.0 }
 0x149   : > { %v1051_v9 = vpack.c.bf16 %v1003_v63, %v1001_v56  ;;  %v921_v56 = vmax.f32 %v2599_v47, 0.0 }
 0x14a   : > { %v766_v33 = vpop.f32.mrb[48].mxu1  ;;  %v1052_v34 = vpack.c.bf16 %v1004_v36, %v1002_v60 }
 0x14b   : > { %v911_v24 = vmax.f32 %v766_v33, 0.0  ;;  %v768_v49 = vpop.f32.mrb[49].mxu1 }
 0x14c   : > { %v912_v35 = vmax.f32 %v768_v49, 0.0  ;;  %v770_v38 = vpop.f32.mrb[50].mxu1  ;;  %1363 = vmatprep.mubr.bf16.mxu0 %v1052_v34  ;;  %v929_v49 = vmax.f32 %v2611_v12, 0.0 }
 0x14d   : > { %v1005_v41 = vmax.f32 %v909_v3, %v911_v24  ;;  %v915_v28 = vmax.f32 %v770_v38, 0.0  ;;  %v772_v43 = vpop.f32.mrb[51].mxu1  ;;  %1364 = vmatmul.mubr.bf16.gmra.mrb[76].mxu0 %v1051_v9  ;;  %v926_v3 = vmax.f32 %v2609_v5, 0.0  ;;  %v933_v5 = vmax.f32 %v2619_v54, 0.0 }
 0x14e   : > { %v1006_v14 = vmax.f32 %v910_v11, %v912_v35  ;;  %v916_v30 = vmax.f32 %v772_v43, 0.0 }
 0x14f   : > { %v1007_v45 = vmax.f32 %v913_v40, %v915_v28  ;;  %v930_v40 = vmax.f32 %v2614_v52, 0.0 }
 0x150   : > { %v1008_v46 = vmax.f32 %v914_v26, %v916_v30 }
 0x151   : > { %v1053_v48 = vpack.c.bf16 %v1007_v45, %v1005_v41 }
 0x152   : > { %v776_v61 = vpop.f32.mrb[52].mxu1  ;;  %v1054_v51 = vpack.c.bf16 %v1008_v46, %v1006_v14  ;;  %v934_v14 = vmax.f32 %v2621_v16, 0.0  ;;  %v2175_v16 = vld [vmem:[%s2717_s3 + $0x20] sm:$0xff]  }
 0x153   : > { %v919_v53 = vmax.f32 %v776_v61, 0.0  ;;  %v778_v18 = vpop.f32.mrb[53].mxu1  ;;  %2026 = vmatprep.subr.bf16.mxu1 %v2175_v16 }
 0x154   : > { %v920_v32 = vmax.f32 %v778_v18, 0.0  ;;  %v780_v55 = vpop.f32.mrb[54].mxu1  ;;  %1373 = vmatprep.mubr.bf16.mxu0 %v1054_v51  ;;  %2027 = vmatpush3.bf16.msra.mxu1 %v2175_v16 }
 0x155   : > { %v1009_v22 = vmax.f32 %v917_v58, %v919_v53  ;;  %v923_v39 = vmax.f32 %v780_v55, 0.0  ;;  %v782_v57 = vpop.f32.mrb[55].mxu1  ;;  %1374 = vmatmul.mubr.bf16.gmra.mrb[80].mxu0 %v1053_v48  ;;  %v938_v53 = vmax.f32 %v2626_v37, 0.0 }
 0x156   : > { %v1010_v60 = vmax.f32 %v918_v50, %v920_v32  ;;  %v924_v42 = vmax.f32 %v782_v57, 0.0  ;;  %v937_v50 = vmax.f32 %v2623_v20, 0.0  ;;  %v941_v20 = vmax.f32 %v2469_v1, 0.0 }
 0x157   : > { %v1011_v62 = vmax.f32 %v921_v56, %v923_v39  ;;  %v946_v1 = vmax.f32 %v2475_v8, 0.0  ;;  %v950_v8 = vmax.f32 %v2481_v2, 0.0 }
 0x158   : > { %v1012_v63 = vmax.f32 %v922_v59, %v924_v42 }
 0x159   : > { %v1055_v36 = vpack.c.bf16 %v1011_v62, %v1009_v22  ;;  %v2176_v62 = vld [vmem:[%s2717_s3 + $0x28] sm:$0xff]  }
 0x15a   : > { %v786_v9 = vpop.f32.mrb[56].mxu1  ;;  %v1056_v11 = vpack.c.bf16 %v1012_v63, %v1010_v60  ;;  %v942_v60 = vmax.f32 %v2471_v4, 0.0  ;;  %v945_v63 = vmax.f32 %v2473_v6, 0.0  ;;  %2028 = vmatprep.subr.bf16.mxu1 %v2176_v62  ;;  %v949_v6 = vmax.f32 %v2477_v10, 0.0 }
 0x15b   : > { %v927_v33 = vmax.f32 %v786_v9, 0.0  ;;  %v788_v34 = vpop.f32.mrb[57].mxu1  ;;  %2029 = vmatpush3.bf16.msra.mxu1 %v2176_v62  ;;  %v954_v10 = vmax.f32 %v2489_v15, 0.0  ;;  %v961_v15 = vmax.f32 %v2501_v21, 0.0 }
 0x15c   : > { %v928_v47 = vmax.f32 %v788_v34, 0.0  ;;  %v790_v24 = vpop.f32.mrb[58].mxu1  ;;  %1383 = vmatprep.mubr.bf16.mxu0 %v1056_v11  ;;  %v2177_v34 = vld [vmem:[%s2717_s3 + $0x30] sm:$0xff]  }
 0x15d   : > { %v1013_v35 = vmax.f32 %v925_v44, %v927_v33  ;;  %v931_v0 = vmax.f32 %v790_v24, 0.0  ;;  %v792_v38 = vpop.f32.mrb[59].mxu1  ;;  %1384 = vmatmul.mubr.bf16.gmra.mrb[84].mxu0 %v1055_v36  ;;  %2030 = vmatprep.subr.bf16.mxu1 %v2177_v34 }
 0x15e   : > { %v1014_v41 = vmax.f32 %v926_v3, %v928_v47  ;;  %v932_v7 = vmax.f32 %v792_v38, 0.0 }
 0x15f   : > { %v1015_v28 = vmax.f32 %v929_v49, %v931_v0  ;;  %2031 = vmatpush3.bf16.msra.mxu1 %v2177_v34 }
 0x160   : > { %v1016_v43 = vmax.f32 %v930_v40, %v932_v7  ;;  %v953_v7 = vmax.f32 %v2485_v13, 0.0  ;;  %v958_v13 = vmax.f32 %v2497_v19, 0.0  ;;  %v965_v19 = vmax.f32 %v2509_v25, 0.0 }
 0x161   : > { %v1057_v26 = vpack.c.bf16 %v1015_v28, %v1013_v35 }
 0x162   : > { %v796_v30 = vpop.f32.mrb[60].mxu1  ;;  %v1058_v45 = vpack.c.bf16 %v1016_v43, %v1014_v41  ;;  %v2178_v41 = vld [vmem:[%s2717_s3 + $0x38] sm:$0xff]  }
 0x163   : > { %v935_v46 = vmax.f32 %v796_v30, 0.0  ;;  %v798_v58 = vpop.f32.mrb[61].mxu1  ;;  %2032 = vmatprep.subr.bf16.mxu1 %v2178_v41 }
 0x164   : > { %v936_v12 = vmax.f32 %v798_v58, 0.0  ;;  %v800_v48 = vpop.f32.mrb[62].mxu1  ;;  %1393 = vmatprep.mubr.bf16.mxu0 %v1058_v45  ;;  %2033 = vmatpush3.bf16.msra.mxu1 %v2178_v41 }
 0x165   : > { %v1017_v61 = vmax.f32 %v933_v5, %v935_v46  ;;  %v939_v52 = vmax.f32 %v800_v48, 0.0  ;;  %v802_v51 = vpop.f32.mrb[63].mxu1  ;;  %1394 = vmatmul.mubr.bf16.gmra.mrb[88].mxu0 %v1057_v26 }
 0x166   : > { %v1018_v18 = vmax.f32 %v934_v14, %v936_v12  ;;  %v940_v54 = vmax.f32 %v802_v51, 0.0  ;;  %v957_v12 = vmax.f32 %v2493_v17, 0.0 }
 0x167   : > { %v1019_v32 = vmax.f32 %v937_v50, %v939_v52 }
 0x168   : > { %v1020_v55 = vmax.f32 %v938_v53, %v940_v54  ;;  %v962_v54 = vmax.f32 %v2505_v23, 0.0 }
 0x169   : > { %v1059_v56 = vpack.c.bf16 %v1019_v32, %v1017_v61 }
 0x16a   : > { %v806_v22 = vpop.f32.mrb[64].mxu1  ;;  %v1060_v39 = vpack.c.bf16 %v1020_v55, %v1018_v18 }
 0x16b   : > { %v943_v57 = vmax.f32 %v806_v22, 0.0  ;;  %v808_v59 = vpop.f32.mrb[65].mxu1 }
 0x16c   : > { %v944_v37 = vmax.f32 %v808_v59, 0.0  ;;  %v810_v42 = vpop.f32.mrb[66].mxu1  ;;  %1403 = vmatprep.mubr.bf16.mxu0 %v1060_v39  ;;  %v966_v59 = vmax.f32 %v2513_v27, 0.0 }
 0x16d   : > { %v1021_v44 = vmax.f32 %v941_v20, %v943_v57  ;;  %v947_v36 = vmax.f32 %v810_v42, 0.0  ;;  %v812_v3 = vpop.f32.mrb[67].mxu1  ;;  %1404 = vmatmul.mubr.bf16.gmra.mrb[92].mxu0 %v1059_v56 }
 0x16e   : > { %v1022_v9 = vmax.f32 %v942_v60, %v944_v37  ;;  %v948_v11 = vmax.f32 %v812_v3, 0.0  ;;  %v969_v37 = vmax.f32 %v2517_v29, 0.0 }
 0x16f   : > { %v1023_v33 = vmax.f32 %v945_v63, %v947_v36  ;;  %v970_v63 = vmax.f32 %v2521_v31, 0.0 }
 0x170   : > { %v1024_v4 = vmax.f32 %v946_v1, %v948_v11 }
 0x171   : > { %v1061_v47 = vpack.c.bf16 %v1023_v33, %v1021_v44 }
 0x172   : > { %v816_v24 = vpop.f32.mrb[68].mxu1  ;;  %v1062_v49 = vpack.c.bf16 %v1024_v4, %v1022_v9 }
 0x173   : > { %v951_v35 = vmax.f32 %v816_v24, 0.0  ;;  %v818_v0 = vpop.f32.mrb[69].mxu1 }
 0x174   : > { %v952_v38 = vmax.f32 %v818_v0, 0.0  ;;  %v820_v40 = vpop.f32.mrb[70].mxu1  ;;  %1413 = vmatprep.mubr.bf16.mxu0 %v1062_v49 }
 0x175   : > { %v1025_v28 = vmax.f32 %v949_v6, %v951_v35  ;;  %v955_v43 = vmax.f32 %v820_v40, 0.0  ;;  %v822_v5 = vpop.f32.mrb[71].mxu1  ;;  %1414 = vmatmul.mubr.bf16.gmra.mrb[96].mxu0 %v1061_v47 }
 0x176   : > { %v1026_v26 = vmax.f32 %v950_v8, %v952_v38  ;;  %v956_v14 = vmax.f32 %v822_v5, 0.0 }
 0x177   : > { %v1027_v30 = vmax.f32 %v953_v7, %v955_v43 }
 0x178   : > { %v1028_v2 = vmax.f32 %v954_v10, %v956_v14 }
 0x179   : > { %v1063_v45 = vpack.c.bf16 %v1027_v30, %v1025_v28 }
 0x17a   : > { %v826_v46 = vpop.f32.mrb[72].mxu1  ;;  %v1064_v58 = vpack.c.bf16 %v1028_v2, %v1026_v26 }
 0x17b   : > { %v959_v48 = vmax.f32 %v826_v46, 0.0  ;;  %v828_v50 = vpop.f32.mrb[73].mxu1 }
 0x17c   : > { %v960_v61 = vmax.f32 %v828_v50, 0.0  ;;  %v830_v52 = vpop.f32.mrb[74].mxu1  ;;  %1423 = vmatprep.mubr.bf16.mxu0 %v1064_v58 }
 0x17d   : > { %v1029_v51 = vmax.f32 %v957_v12, %v959_v48  ;;  %v963_v53 = vmax.f32 %v830_v52, 0.0  ;;  %v832_v18 = vpop.f32.mrb[75].mxu1  ;;  %1424 = vmatmul.mubr.bf16.gmra.mrb[100].mxu0 %v1063_v45 }
 0x17e   : > { %v1030_v32 = vmax.f32 %v958_v13, %v960_v61  ;;  %v964_v55 = vmax.f32 %v832_v18, 0.0 }
 0x17f   : > { %v1031_v16 = vmax.f32 %v961_v15, %v963_v53 }
 0x180   : > { %v1032_v56 = vmax.f32 %v962_v54, %v964_v55 }
 0x181   : > { %v1065_v17 = vpack.c.bf16 %v1031_v16, %v1029_v51 }
 0x182   : > { %v836_v22 = vpop.f32.mrb[76].mxu1  ;;  %v1066_v39 = vpack.c.bf16 %v1032_v56, %v1030_v32 }
 0x183   : > { %v967_v20 = vmax.f32 %v836_v22, 0.0  ;;  %v838_v57 = vpop.f32.mrb[77].mxu1 }
 0x184   : > { %v968_v21 = vmax.f32 %v838_v57, 0.0  ;;  %v840_v60 = vpop.f32.mrb[78].mxu1  ;;  %1433 = vmatprep.mubr.bf16.mxu0 %v1066_v39 }
 0x185   : > { %v1033_v42 = vmax.f32 %v965_v19, %v967_v20  ;;  %v971_v23 = vmax.f32 %v840_v60, 0.0  ;;  %v842_v62 = vpop.f32.mrb[79].mxu1  ;;  %1434 = vmatmul.mubr.bf16.gmra.mrb[104].mxu0 %v1065_v17 }
 0x186   : > { %v1034_v44 = vmax.f32 %v966_v59, %v968_v21  ;;  %v972_v36 = vmax.f32 %v842_v62, 0.0 }
 0x187   : > { %v1035_v3 = vmax.f32 %v969_v37, %v971_v23 }
 0x188   : > { %v1036_v1 = vmax.f32 %v970_v63, %v972_v36 }
 0x189   : > { %v1067_v25 = vpack.c.bf16 %v1035_v3, %v1033_v42 }
 0x18a   : > { %v1068_v9 = vpack.c.bf16 %v1036_v1, %v1034_v44 }
 0x18c   : > { %1443 = vmatprep.mubr.bf16.mxu0 %v1068_v9 }
 0x18d   : > { %1444 = vmatmul.mubr.bf16.gmra.mrb[108].mxu0 %v1067_v25 }
 0x1e8   : > { %v1295_v27 = vpop.f32.mrb[48].mxu0 }
 0x1e9   : > { %v1454_v11 = vmax.f32 %v1295_v27, 0.0  ;;  %v1297_v33 = vpop.f32.mrb[49].mxu0 }
 0x1ea   : > { %v1486_v4 = vmax.f32 %v1297_v33, 0.0  ;;  %v1299_v34 = vpop.f32.mrb[50].mxu0 }
 0x1eb   : > { %v1455_v29 = vmax.f32 %v1299_v34, 0.0  ;;  %v1301_v47 = vpop.f32.mrb[51].mxu0 }
 0x1ec   : > { %v1518_v24 = vmax.f32 %v1454_v11, %v1486_v4  ;;  %v1487_v49 = vmax.f32 %v1301_v47, 0.0 }
 0x1ee   : > { %v1519_v6 = vmax.f32 %v1455_v29, %v1487_v49 }
 0x1f0   : > { %v1305_v35 = vpop.f32.mrb[52].mxu0  ;;  %v1550_v31 = vpack.c.bf16 %v1519_v6, %v1518_v24 }
 0x1f1   : > { %v1456_v0 = vmax.f32 %v1305_v35, 0.0  ;;  %v1307_v8 = vpop.f32.mrb[53].mxu0 }
 0x1f2   : > { %v1488_v38 = vmax.f32 %v1307_v8, 0.0  ;;  %v1309_v40 = vpop.f32.mrb[54].mxu0  ;;  %2034 = vmatprep.mubr.bf16.mxu1 %v1550_v31 }
 0x1f3   : > { %v1457_v41 = vmax.f32 %v1309_v40, 0.0  ;;  %v1311_v7 = vpop.f32.mrb[55].mxu0 }
 0x1f4   : > { %v1520_v28 = vmax.f32 %v1456_v0, %v1488_v38  ;;  %v1489_v43 = vmax.f32 %v1311_v7, 0.0 }
 0x1f6   : > { %v1521_v5 = vmax.f32 %v1457_v41, %v1489_v43 }
 0x1f8   : > { %v1551_v10 = vpack.c.bf16 %v1521_v5, %v1520_v28  ;;  %v1315_v26 = vpop.f32.mrb[56].mxu0 }
 0x1f9   : > { %v1458_v14 = vmax.f32 %v1315_v26, 0.0  ;;  %v1317_v30 = vpop.f32.mrb[57].mxu0 }
 0x1fa   : > { %v1490_v2 = vmax.f32 %v1317_v30, 0.0  ;;  %v1319_v45 = vpop.f32.mrb[58].mxu0  ;;  %2035 = vmatmul.mubr.bf16.vlgmr.msra.gmra.mrb[80].mxu1 %v1551_v10 }
 0x1fb   : > { %v1459_v46 = vmax.f32 %v1319_v45, 0.0  ;;  %v1321_v58 = vpop.f32.mrb[59].mxu0 }
 0x1fc   : > { %v1522_v12 = vmax.f32 %v1458_v14, %v1490_v2  ;;  %v1491_v48 = vmax.f32 %v1321_v58, 0.0 }
 0x1fe   : > { %v1523_v50 = vmax.f32 %v1459_v46, %v1491_v48 }
 0x200   : > { %v1325_v13 = vpop.f32.mrb[60].mxu0  ;;  %v1552_v61 = vpack.c.bf16 %v1523_v50, %v1522_v12 }
 0x201   : > { %v1460_v52 = vmax.f32 %v1325_v13, 0.0  ;;  %v1327_v15 = vpop.f32.mrb[61].mxu0 }
 0x202   : > { %v1492_v51 = vmax.f32 %v1327_v15, 0.0  ;;  %v1329_v53 = vpop.f32.mrb[62].mxu0  ;;  %2038 = vmatprep.mubr.bf16.mxu1 %v1552_v61 }
 0x203   : > { %v1461_v18 = vmax.f32 %v1329_v53, 0.0  ;;  %v1331_v54 = vpop.f32.mrb[63].mxu0 }
 0x204   : > { %v1524_v32 = vmax.f32 %v1460_v52, %v1492_v51  ;;  %v1493_v55 = vmax.f32 %v1331_v54, 0.0 }
 0x206   : > { %v1525_v16 = vmax.f32 %v1461_v18, %v1493_v55 }
 0x208   : > { %v1335_v56 = vpop.f32.mrb[64].mxu0  ;;  %v1553_v17 = vpack.c.bf16 %v1525_v16, %v1524_v32 }
 0x209   : > { %v1462_v22 = vmax.f32 %v1335_v56, 0.0  ;;  %v1337_v39 = vpop.f32.mrb[65].mxu0 }
 0x20a   : > { %v1494_v19 = vmax.f32 %v1337_v39, 0.0  ;;  %v1339_v20 = vpop.f32.mrb[66].mxu0  ;;  %2039 = vmatmul.mubr.bf16.gmra.mrb[84].mxu1 %v1553_v17 }
 0x20b   : > { %v1463_v57 = vmax.f32 %v1339_v20, 0.0  ;;  %v1341_v59 = vpop.f32.mrb[67].mxu0 }
 0x20c   : > { %v1526_v21 = vmax.f32 %v1462_v22, %v1494_v19  ;;  %v1495_v60 = vmax.f32 %v1341_v59, 0.0 }
 0x20e   : > { %v1527_v37 = vmax.f32 %v1463_v57, %v1495_v60 }
 0x210   : > { %v1345_v42 = vpop.f32.mrb[68].mxu0  ;;  %v1554_v23 = vpack.c.bf16 %v1527_v37, %v1526_v21 }
 0x211   : > { %v1464_v62 = vmax.f32 %v1345_v42, 0.0  ;;  %v1347_v63 = vpop.f32.mrb[69].mxu0 }
 0x212   : > { %v1496_v44 = vmax.f32 %v1347_v63, 0.0  ;;  %v1349_v36 = vpop.f32.mrb[70].mxu0  ;;  %2042 = vmatprep.mubr.bf16.mxu1 %v1554_v23 }
 0x213   : > { %v1465_v3 = vmax.f32 %v1349_v36, 0.0  ;;  %v1351_v1 = vpop.f32.mrb[71].mxu0 }
 0x214   : > { %v1528_v25 = vmax.f32 %v1464_v62, %v1496_v44  ;;  %v1497_v9 = vmax.f32 %v1351_v1, 0.0 }
 0x216   : > { %v1529_v27 = vmax.f32 %v1465_v3, %v1497_v9 }
 0x218   : > { %v1355_v11 = vpop.f32.mrb[72].mxu0  ;;  %v1555_v33 = vpack.c.bf16 %v1529_v27, %v1528_v25 }
 0x219   : > { %v1466_v4 = vmax.f32 %v1355_v11, 0.0  ;;  %v1357_v34 = vpop.f32.mrb[73].mxu0 }
 0x21a   : > { %v1498_v29 = vmax.f32 %v1357_v34, 0.0  ;;  %v1359_v47 = vpop.f32.mrb[74].mxu0  ;;  %2043 = vmatmul.mubr.bf16.gmra.mrb[88].mxu1 %v1555_v33 }
 0x21b   : > { %v1467_v24 = vmax.f32 %v1359_v47, 0.0  ;;  %v1361_v49 = vpop.f32.mrb[75].mxu0 }
 0x21c   : > { %v1530_v6 = vmax.f32 %v1466_v4, %v1498_v29  ;;  %v1499_v35 = vmax.f32 %v1361_v49, 0.0 }
 0x21e   : > { %v1531_v31 = vmax.f32 %v1467_v24, %v1499_v35 }
 0x220   : > { %v1365_v0 = vpop.f32.mrb[76].mxu0  ;;  %v1556_v8 = vpack.c.bf16 %v1531_v31, %v1530_v6 }
 0x221   : > { %v1468_v38 = vmax.f32 %v1365_v0, 0.0  ;;  %v1367_v40 = vpop.f32.mrb[77].mxu0 }
 0x222   : > { %v1500_v41 = vmax.f32 %v1367_v40, 0.0  ;;  %v1369_v7 = vpop.f32.mrb[78].mxu0  ;;  %2046 = vmatprep.mubr.bf16.mxu1 %v1556_v8 }
 0x223   : > { %v1469_v28 = vmax.f32 %v1369_v7, 0.0  ;;  %v1371_v43 = vpop.f32.mrb[79].mxu0 }
 0x224   : > { %v1532_v5 = vmax.f32 %v1468_v38, %v1500_v41  ;;  %v1501_v10 = vmax.f32 %v1371_v43, 0.0 }
 0x226   : > { %v1533_v26 = vmax.f32 %v1469_v28, %v1501_v10 }
 0x228   : > { %v1375_v14 = vpop.f32.mrb[80].mxu0  ;;  %v1557_v30 = vpack.c.bf16 %v1533_v26, %v1532_v5 }
 0x229   : > { %v1470_v2 = vmax.f32 %v1375_v14, 0.0  ;;  %v1377_v45 = vpop.f32.mrb[81].mxu0 }
 0x22a   : > { %v1502_v46 = vmax.f32 %v1377_v45, 0.0  ;;  %v1379_v58 = vpop.f32.mrb[82].mxu0  ;;  %2047 = vmatmul.mubr.bf16.gmra.mrb[92].mxu1 %v1557_v30 }
 0x22b   : > { %v1471_v12 = vmax.f32 %v1379_v58, 0.0  ;;  %v1381_v48 = vpop.f32.mrb[83].mxu0 }
 0x22c   : > { %v1534_v50 = vmax.f32 %v1470_v2, %v1502_v46  ;;  %v1503_v13 = vmax.f32 %v1381_v48, 0.0 }
 0x22e   : > { %v1535_v61 = vmax.f32 %v1471_v12, %v1503_v13 }
 0x230   : > { %v1385_v52 = vpop.f32.mrb[84].mxu0  ;;  %v1558_v15 = vpack.c.bf16 %v1535_v61, %v1534_v50 }
 0x231   : > { %v1472_v51 = vmax.f32 %v1385_v52, 0.0  ;;  %v1387_v53 = vpop.f32.mrb[85].mxu0 }
 0x232   : > { %v1504_v18 = vmax.f32 %v1387_v53, 0.0  ;;  %v1389_v54 = vpop.f32.mrb[86].mxu0  ;;  %2050 = vmatprep.mubr.bf16.mxu1 %v1558_v15 }
 0x233   : > { %v1473_v32 = vmax.f32 %v1389_v54, 0.0  ;;  %v1391_v55 = vpop.f32.mrb[87].mxu0 }
 0x234   : > { %v1536_v16 = vmax.f32 %v1472_v51, %v1504_v18  ;;  %v1505_v56 = vmax.f32 %v1391_v55, 0.0 }
 0x236   : > { %v1537_v17 = vmax.f32 %v1473_v32, %v1505_v56 }
 0x238   : > { %v1395_v22 = vpop.f32.mrb[88].mxu0  ;;  %v1559_v39 = vpack.c.bf16 %v1537_v17, %v1536_v16 }
 0x239   : > { %v1474_v19 = vmax.f32 %v1395_v22, 0.0  ;;  %v1397_v20 = vpop.f32.mrb[89].mxu0 }
 0x23a   : > { %v1506_v57 = vmax.f32 %v1397_v20, 0.0  ;;  %v1399_v59 = vpop.f32.mrb[90].mxu0  ;;  %2051 = vmatmul.mubr.bf16.gmra.mrb[96].mxu1 %v1559_v39 }
 0x23b   : > { %v1475_v21 = vmax.f32 %v1399_v59, 0.0  ;;  %v1401_v60 = vpop.f32.mrb[91].mxu0 }
 0x23c   : > { %v1538_v37 = vmax.f32 %v1474_v19, %v1506_v57  ;;  %v1507_v42 = vmax.f32 %v1401_v60, 0.0 }
 0x23e   : > { %v1539_v23 = vmax.f32 %v1475_v21, %v1507_v42 }
 0x240   : > { %v1405_v62 = vpop.f32.mrb[92].mxu0  ;;  %v1560_v63 = vpack.c.bf16 %v1539_v23, %v1538_v37 }
 0x241   : > { %v1476_v44 = vmax.f32 %v1405_v62, 0.0  ;;  %v1407_v36 = vpop.f32.mrb[93].mxu0 }
 0x242   : > { %v1508_v3 = vmax.f32 %v1407_v36, 0.0  ;;  %v1409_v1 = vpop.f32.mrb[94].mxu0  ;;  %2054 = vmatprep.mubr.bf16.mxu1 %v1560_v63 }
 0x243   : > { %v1477_v25 = vmax.f32 %v1409_v1, 0.0  ;;  %v1411_v9 = vpop.f32.mrb[95].mxu0 }
 0x244   : > { %v1540_v27 = vmax.f32 %v1476_v44, %v1508_v3  ;;  %v1509_v11 = vmax.f32 %v1411_v9, 0.0 }
 0x246   : > { %v1541_v33 = vmax.f32 %v1477_v25, %v1509_v11 }
 0x248   : > { %v1415_v4 = vpop.f32.mrb[96].mxu0  ;;  %v1561_v34 = vpack.c.bf16 %v1541_v33, %v1540_v27 }
 0x249   : > { %v1478_v29 = vmax.f32 %v1415_v4, 0.0  ;;  %v1417_v47 = vpop.f32.mrb[97].mxu0 }
 0x24a   : > { %v1510_v24 = vmax.f32 %v1417_v47, 0.0  ;;  %v1419_v49 = vpop.f32.mrb[98].mxu0  ;;  %2055 = vmatmul.mubr.bf16.gmra.mrb[100].mxu1 %v1561_v34 }
 0x24b   : > { %v1479_v6 = vmax.f32 %v1419_v49, 0.0  ;;  %v1421_v35 = vpop.f32.mrb[99].mxu0 }
 0x24c   : > { %v1542_v31 = vmax.f32 %v1478_v29, %v1510_v24  ;;  %v1511_v0 = vmax.f32 %v1421_v35, 0.0 }
 0x24e   : > { %v1543_v8 = vmax.f32 %v1479_v6, %v1511_v0 }
 0x250   : > { %v1425_v38 = vpop.f32.mrb[100].mxu0  ;;  %v1562_v40 = vpack.c.bf16 %v1543_v8, %v1542_v31 }
 0x251   : > { %v1480_v41 = vmax.f32 %v1425_v38, 0.0  ;;  %v1427_v7 = vpop.f32.mrb[101].mxu0 }
 0x252   : > { %v1512_v28 = vmax.f32 %v1427_v7, 0.0  ;;  %v1429_v43 = vpop.f32.mrb[102].mxu0  ;;  %2058 = vmatprep.mubr.bf16.mxu1 %v1562_v40 }
 0x253   : > { %v1481_v5 = vmax.f32 %v1429_v43, 0.0  ;;  %v1431_v10 = vpop.f32.mrb[103].mxu0 }
 0x254   : > { %v1544_v26 = vmax.f32 %v1480_v41, %v1512_v28  ;;  %v1513_v14 = vmax.f32 %v1431_v10, 0.0 }
 0x256   : > { %v1545_v30 = vmax.f32 %v1481_v5, %v1513_v14 }
 0x258   : > { %v1435_v2 = vpop.f32.mrb[104].mxu0  ;;  %v1563_v45 = vpack.c.bf16 %v1545_v30, %v1544_v26 }
 0x259   : > { %v1482_v46 = vmax.f32 %v1435_v2, 0.0  ;;  %v1437_v58 = vpop.f32.mrb[105].mxu0 }
 0x25a   : > { %v1514_v12 = vmax.f32 %v1437_v58, 0.0  ;;  %v1439_v48 = vpop.f32.mrb[106].mxu0  ;;  %2059 = vmatmul.mubr.bf16.gmra.mrb[104].mxu1 %v1563_v45 }
 0x25b   : > { %v1483_v50 = vmax.f32 %v1439_v48, 0.0  ;;  %v1441_v13 = vpop.f32.mrb[107].mxu0 }
 0x25c   : > { %v1546_v61 = vmax.f32 %v1482_v46, %v1514_v12  ;;  %v1515_v52 = vmax.f32 %v1441_v13, 0.0 }
 0x25e   : > { %v1547_v15 = vmax.f32 %v1483_v50, %v1515_v52 }
 0x260   : > { %v1445_v51 = vpop.f32.mrb[108].mxu0  ;;  %v1564_v53 = vpack.c.bf16 %v1547_v15, %v1546_v61 }
 0x261   : > { %v1484_v18 = vmax.f32 %v1445_v51, 0.0  ;;  %v1447_v54 = vpop.f32.mrb[109].mxu0 }
 0x262   : > { %v1516_v32 = vmax.f32 %v1447_v54, 0.0  ;;  %v1449_v55 = vpop.f32.mrb[110].mxu0  ;;  %2062 = vmatprep.mubr.bf16.mxu1 %v1564_v53 }
 0x263   : > { %v1485_v16 = vmax.f32 %v1449_v55, 0.0  ;;  %v1451_v56 = vpop.f32.mrb[111].mxu0 }
 0x264   : > { %v1548_v17 = vmax.f32 %v1484_v18, %v1516_v32  ;;  %v1517_v22 = vmax.f32 %v1451_v56, 0.0 }
 0x266   : > { %v1549_v39 = vmax.f32 %v1485_v16, %v1517_v22 }
 0x268   : > { %v1565_v19 = vpack.c.bf16 %v1549_v39, %v1548_v17 }
 0x26a   : > { %2063 = vmatmul.mubr.bf16.gmra.mrb[108].mxu1 %v1565_v19 }
 0x2cd   : > { %v2036_v20 = vpop.f32.mrb[80].mxu1 }
 0x2ce   : > { %1793 = vst [vmem:[%s2677_s18 + $0x10] sm:$0xff] %v2036_v20  ;;  %v1664_v57 = vpop.f32.mrb[81].mxu1 }
 0x2cf   : > { %1791 = vst [vmem:[%s2677_s18] sm:$0xff] %v1664_v57  ;;  %v2037_v59 = vpop.f32.mrb[82].mxu1 }
 0x2d0   : > { %1794 = vst [vmem:[%s2677_s18 + $0x18] sm:$0xff] %v2037_v59  ;;  %v1667_v21 = vpop.f32.mrb[83].mxu1 }
 0x2d1   : > { %1792 = vst [vmem:[%s2677_s18 + $0x8] sm:$0xff] %v1667_v21 }
 0x2dd   : > { %v2040_v60 = vpop.f32.mrb[84].mxu1 }
 0x2de   : > { %1797 = vst [vmem:[%s2677_s18 + $0x30] sm:$0xff] %v2040_v60  ;;  %v1680_v37 = vpop.f32.mrb[85].mxu1 }
 0x2df   : > { %1795 = vst [vmem:[%s2677_s18 + $0x20] sm:$0xff] %v1680_v37  ;;  %v2041_v42 = vpop.f32.mrb[86].mxu1 }
 0x2e0   : > { %1798 = vst [vmem:[%s2677_s18 + $0x38] sm:$0xff] %v2041_v42  ;;  %v1683_v23 = vpop.f32.mrb[87].mxu1 }
 0x2e1   : > { %1796 = vst [vmem:[%s2677_s18 + $0x28] sm:$0xff] %v1683_v23 }
 0x2ed   : > { %v2044_v62 = vpop.f32.mrb[88].mxu1 }
 0x2ee   : > { %1801 = vst [vmem:[%s2677_s18 + $0x50] sm:$0xff] %v2044_v62  ;;  %v1696_v63 = vpop.f32.mrb[89].mxu1 }
 0x2ef   : > { %1799 = vst [vmem:[%s2677_s18 + $0x40] sm:$0xff] %v1696_v63  ;;  %v2045_v44 = vpop.f32.mrb[90].mxu1 }
 0x2f0   : > { %1802 = vst [vmem:[%s2677_s18 + $0x58] sm:$0xff] %v2045_v44  ;;  %v1699_v36 = vpop.f32.mrb[91].mxu1 }
 0x2f1   : > { %1800 = vst [vmem:[%s2677_s18 + $0x48] sm:$0xff] %v1699_v36 }
 0x2fd   : > { %v2048_v3 = vpop.f32.mrb[92].mxu1 }
 0x2fe   : > { %1805 = vst [vmem:[%s2677_s18 + $0x70] sm:$0xff] %v2048_v3  ;;  %v1712_v1 = vpop.f32.mrb[93].mxu1 }
 0x2ff   : > { %1803 = vst [vmem:[%s2677_s18 + $0x60] sm:$0xff] %v1712_v1  ;;  %v2049_v25 = vpop.f32.mrb[94].mxu1 }
 0x300   : > { %1806 = vst [vmem:[%s2677_s18 + $0x78] sm:$0xff] %v2049_v25  ;;  %v1715_v9 = vpop.f32.mrb[95].mxu1 }
 0x301   : > { %1804 = vst [vmem:[%s2677_s18 + $0x68] sm:$0xff] %v1715_v9 }
 0x30d   : > { %v2052_v27 = vpop.f32.mrb[96].mxu1 }
 0x30e   : > { %1809 = vst [vmem:[%s2677_s18 + $0x90] sm:$0xff] %v2052_v27  ;;  %v1728_v11 = vpop.f32.mrb[97].mxu1 }
 0x30f   : > { %1807 = vst [vmem:[%s2677_s18 + $0x80] sm:$0xff] %v1728_v11  ;;  %v2053_v33 = vpop.f32.mrb[98].mxu1 }
 0x310   : > { %1810 = vst [vmem:[%s2677_s18 + $0x98] sm:$0xff] %v2053_v33  ;;  %v1731_v4 = vpop.f32.mrb[99].mxu1 }
 0x311   : > { %1808 = vst [vmem:[%s2677_s18 + $0x88] sm:$0xff] %v1731_v4 }
 0x31d   : > { %v2056_v34 = vpop.f32.mrb[100].mxu1 }
 0x31e   : > { %1813 = vst [vmem:[%s2677_s18 + $0xb0] sm:$0xff] %v2056_v34  ;;  %v1744_v29 = vpop.f32.mrb[101].mxu1 }
 0x31f   : > { %1811 = vst [vmem:[%s2677_s18 + $0xa0] sm:$0xff] %v1744_v29  ;;  %v2057_v47 = vpop.f32.mrb[102].mxu1 }
 0x320   : > { %1814 = vst [vmem:[%s2677_s18 + $0xb8] sm:$0xff] %v2057_v47  ;;  %v1747_v24 = vpop.f32.mrb[103].mxu1 }
 0x321   : > { %1812 = vst [vmem:[%s2677_s18 + $0xa8] sm:$0xff] %v1747_v24 }
 0x32d   : > { %v2060_v49 = vpop.f32.mrb[104].mxu1 }
 0x32e   : > { %1817 = vst [vmem:[%s2677_s18 + $0xd0] sm:$0xff] %v2060_v49  ;;  %v1760_v6 = vpop.f32.mrb[105].mxu1 }
 0x32f   : > { %1815 = vst [vmem:[%s2677_s18 + $0xc0] sm:$0xff] %v1760_v6  ;;  %v2061_v35 = vpop.f32.mrb[106].mxu1 }
 0x330   : > { %1818 = vst [vmem:[%s2677_s18 + $0xd8] sm:$0xff] %v2061_v35  ;;  %v1763_v31 = vpop.f32.mrb[107].mxu1 }
 0x331   : > { %1816 = vst [vmem:[%s2677_s18 + $0xc8] sm:$0xff] %v1763_v31 }
 0x33d   : > { %v2064_v0 = vpop.f32.mrb[108].mxu1 }
 0x33e   : > { %1821 = vst [vmem:[%s2677_s18 + $0xf0] sm:$0xff] %v2064_v0  ;;  %v1776_v8 = vpop.f32.mrb[109].mxu1 }
 0x33f   : > { %1819 = vst [vmem:[%s2677_s18 + $0xe0] sm:$0xff] %v1776_v8  ;;  %v2065_v38 = vpop.f32.mrb[110].mxu1 }
 0x340   : > { %1822 = vst [vmem:[%s2677_s18 + $0xf8] sm:$0xff] %v2065_v38  ;;  %v1779_v40 = vpop.f32.mrb[111].mxu1 }
 0x341   : > { %1820 = vst [vmem:[%s2677_s18 + $0xe8] sm:$0xff] %v1779_v40 }
 0x342 PF: > { %s14_s15 = sadd.s32 1, %s2185_s15  }
 0x343   : > { %p11_p4 = scmp.ge.s32.totalorder %s14_s15, 4  }
 0x345   :  { %13 = sbr.rel (!%p11_p4) target bundleno = 1 (0x1), region = 66 }

</bundles_post_ra>
